<compile_context>
chip_gen: v5e
topology: v5e:2x2
jax: 0.10.0
libtpu: 0.0.40
codegen_flags: <defaults>
</compile_context>

<pallas_src>
import functools

import jax
import jax.numpy as jnp
from jax.experimental import pallas as pl
from jax.experimental.pallas import tpu as pltpu


def _mask_dropout_kernel(u_ref, x_ref, o_ref, *, keep_prob, scale):
    # u_ref: (1, 1, L) uniforms for this batch row (mask source, tiny).
    # x_ref / o_ref: (1, TR, L) tile of the flattened input / output.
    u = u_ref[...]
    # Bernoulli(keep_prob) mask scaled by 1 / (1 - dropout / 2); built in the
    # output dtype so the multiply stays narrow for bf16 inputs.
    mask = jnp.where(u < keep_prob, scale, 0.0).astype(o_ref.dtype)
    o_ref[...] = x_ref[...] * mask  # (1, 1, L) broadcasts over the TR rows


def _pick_row_tile(num_rows, lane_len, itemsize, target_bytes=2 * 1024 * 1024):
    """Rows per block: the full extent, or a multiple of 8 near target_bytes."""
    rows = target_bytes // max(1, lane_len * itemsize)
    if rows >= num_rows or num_rows <= 8:
        return num_rows  # full extent is always a legal block shape
    rows = max(8, (rows // 8) * 8)  # multiple-of-8 sublane requirement
    return min(rows, num_rows)


def mask_dropout(x, key, dropout, training=True):
    """Forward pass of MaskDropout. Identity when not training or dropout falsy."""
    if not training or not dropout:
        return x

    B, C, S, D = x.shape
    keep_prob = 1.0 - float(dropout)
    scale = 1.0 / (1.0 - float(dropout) / 2.0)

    # RNG glue in plain JAX (one (B, D) draw); threshold/scale/multiply run in
    # the Pallas kernel.
    # TODO(synk): could move RNG in-kernel via pltpu.prng_seed/prng_random_bits.
    u = jax.random.uniform(key, (B, D), dtype=jnp.float32)

    # Lane-dense flattening of the broadcast dims.
    if D % 128 == 0:
        R, L = C * S, D
        x_r = x.reshape(B, R, L)
        u_r = u.reshape(B, 1, L)
    else:
        # Fold S into the lane dim so the stored last dim is wide (S*D instead
        # of D); the per-batch uniforms are tiled S times (B*S*D floats, tiny).
        R, L = C, S * D
        x_r = x.reshape(B, R, L)
        u_r = jnp.tile(u, (1, S)).reshape(B, 1, L)

    TR = _pick_row_tile(R, L, x.dtype.itemsize)
    nR = pl.cdiv(R, TR)

    kernel = functools.partial(
        _mask_dropout_kernel, keep_prob=keep_prob, scale=scale
    )

    out_flat = pl.pallas_call(
        kernel,
        out_shape=jax.ShapeDtypeStruct((B, R, L), x.dtype),
        grid_spec=pltpu.PrefetchScalarGridSpec(
            num_scalar_prefetch=0,
            grid=(B, nR),
            in_specs=[
                pl.BlockSpec((1, 1, L), lambda b, r: (b, 0, 0)),   # uniforms
                pl.BlockSpec((1, TR, L), lambda b, r: (b, r, 0)),  # x tile
            ],
            out_specs=pl.BlockSpec((1, TR, L), lambda b, r: (b, r, 0)),
        ),
        compiler_params=pltpu.CompilerParams(
            dimension_semantics=("parallel", "parallel"),
        ),
    )(u_r, x_r)

    return out_flat.reshape(B, C, S, D)


def _reference(x, key, dropout):
    B, _, _, D = x.shape
    keep_prob = 1.0 - float(dropout)
    scale = 1.0 / (1.0 - float(dropout) / 2.0)
    u = jax.random.uniform(key, (B, D), dtype=jnp.float32)
    mask = jnp.where(u < keep_prob, jnp.float32(scale), jnp.float32(0.0))
    return x * mask[:, None, None, :].astype(x.dtype)


if __name__ == "__main__":
    key = jax.random.PRNGKey(0)
    kx, km = jax.random.split(key)

    # Path 1: D not a multiple of 128 -> S folded into the lane dim.
    B, C, S, D = 2, 4, 16, 32
    dropout = 0.3
    x = jax.random.normal(kx, (B, C, S, D), dtype=jnp.float32)

    out = jax.block_until_ready(mask_dropout(x, km, dropout, training=True))
    ref = _reference(x, km, dropout)
    assert out.shape == x.shape and out.dtype == x.dtype
    assert jnp.allclose(out, ref, atol=1e-6, rtol=1e-6), "mismatch vs reference"

    # Path 2: D a multiple of 128 -> (B, C*S, D) tiling.
    B2, C2, S2, D2 = 2, 2, 8, 128
    x2 = jax.random.normal(kx, (B2, C2, S2, D2), dtype=jnp.float32)
    out2 = jax.block_until_ready(mask_dropout(x2, km, dropout, training=True))
    ref2 = _reference(x2, km, dropout)
    assert jnp.allclose(out2, ref2, atol=1e-6, rtol=1e-6), "mismatch (D=128 path)"

    # Eval-mode / dropout=None paths are identity (matches PyTorch early return).
    assert jnp.array_equal(mask_dropout(x, km, dropout, training=False), x)
    assert jnp.array_equal(mask_dropout(x, km, None, training=True), x)

    print("KERNEL_OK")
</pallas_src>

<mosaic_0001>
module attributes {stable_mosaic.version = 11 : i64} {
  func.func @_mask_dropout_kernel(%arg0: i32, %arg1: i32, %arg2: memref<1x1x512xf32, #tpu.memory_space<vmem>>, %arg3: memref<1x4x512xf32, #tpu.memory_space<vmem>>, %arg4: memref<1x4x512xf32, #tpu.memory_space<vmem>>) attributes {dimension_semantics = [#tpu.dimension_semantics<parallel>, #tpu.dimension_semantics<parallel>], iteration_bounds = array<i64: 2, 1>, scalar_prefetch = 0 : i64, scratch_operands = 0 : i64, tpu.core_type = #tpu.core_type<tc>, window_params = [{transform_indices = @transform_0, window_bounds = array<i64: 1, 1, 512>}, {transform_indices = @transform_1, window_bounds = array<i64: 1, 4, 512>}, {transform_indices = @transform_2, window_bounds = array<i64: 1, 4, 512>}]} {
    %c0 = arith.constant 0 : index
    %c0_0 = arith.constant 0 : index
    %c0_1 = arith.constant 0 : index
    %0 = vector.load %arg2[%c0, %c0_0, %c0_1] : memref<1x1x512xf32, #tpu.memory_space<vmem>>, vector<1x1x512xf32>
    %cst = arith.constant 0.699999988 : f32
    %1 = vector.broadcast %cst : f32 to vector<1x1x512xf32>
    %2 = arith.cmpf olt, %0, %1 : vector<1x1x512xf32>
    %cst_2 = arith.constant 1.17647064 : f32
    %cst_3 = arith.constant 0.000000e+00 : f32
    %3 = vector.broadcast %cst_2 : f32 to vector<1x1x512xf32>
    %4 = vector.broadcast %cst_3 : f32 to vector<1x1x512xf32>
    %5 = arith.select %2, %3, %4 : vector<1x1x512xi1>, vector<1x1x512xf32>
    %c0_4 = arith.constant 0 : index
    %c0_5 = arith.constant 0 : index
    %c0_6 = arith.constant 0 : index
    %6 = vector.load %arg3[%c0_4, %c0_5, %c0_6] : memref<1x4x512xf32, #tpu.memory_space<vmem>>, vector<1x4x512xf32>
    %7 = vector.broadcast %5 : vector<1x1x512xf32> to vector<1x4x512xf32>
    %8 = arith.mulf %6, %7 : vector<1x4x512xf32>
    %c0_7 = arith.constant 0 : index
    %c0_8 = arith.constant 0 : index
    %c0_9 = arith.constant 0 : index
    %9 = vector.load %arg4[%c0_7, %c0_8, %c0_9] : memref<1x4x512xf32, #tpu.memory_space<vmem>>, vector<1x4x512xf32>
    tpu.vector_store %arg4[%c0_7, %c0_8, %c0_9], %8 {strides = array<i32>} : memref<1x4x512xf32, #tpu.memory_space<vmem>>, vector<1x4x512xf32>,
    return
  }
  func.func @transform_0(%arg0: i32, %arg1: i32) -> (i32, i32, i32) {
    %c0_i32 = arith.constant 0 : i32
    %c0_i32_0 = arith.constant 0 : i32
    %c0_i32_1 = arith.constant 0 : i32
    return %arg0, %c0_i32, %c0_i32_0 : i32, i32, i32
  }
  func.func @transform_1(%arg0: i32, %arg1: i32) -> (i32, i32, i32) {
    %c0_i32 = arith.constant 0 : i32
    %c0_i32_0 = arith.constant 0 : i32
    return %arg0, %arg1, %c0_i32 : i32, i32, i32
  }
  func.func @transform_2(%arg0: i32, %arg1: i32) -> (i32, i32, i32) {
    %c0_i32 = arith.constant 0 : i32
    %c0_i32_0 = arith.constant 0 : i32
    return %arg0, %arg1, %c0_i32 : i32, i32, i32
  }
}

</mosaic_0001>

<bundles_post_ra>
// kernel: tpu_custom_call.1
= control target key start
LH: loop header
LB: loop body
LE: loop exit
PB: predicated region body
PF: predicated region fallthrough
CT: control target
= control target key end

     0   :  { %7 = vsyncpa [#allocation3], 0  ;;  %s756_s0 = inlined_call_operand.hbm [shape: f32[2,1,512], index: 0, kind: input, shape index: {}]   ;;  %s757_s1 = inlined_call_operand.hbm [shape: f32[2,4,512], index: 1, kind: input, shape index: {}]   ;;  %s758_s2 = inlined_call_operand.hbm [shape: f32[2,4,512], index: 2, kind: output, shape index: {}]  }
   0x1   :  { %9 = vsyncpa [#allocation3 + $0x1], 0 }
   0x2   :  { %10 = vsyncpa [#allocation6], 0 }
   0x3   :  { %12 = vsyncpa [#allocation6 + $0x1], 0 }
   0x4   :  { %13 = vsyncpa [#allocation4], 0 }
   0x5   :  { %15 = vsyncpa [#allocation4 + $0x1], 0  ;;  %s618_s9 = smov 0   ;;  %s620_s10 = smov 0  }
   0x6   :  { %s622_s11 = smov 0   ;;  %s624_s12 = smov 0  }
   0x7   :  { %s626_s13 = smov 0   ;;  %s628_s14 = smov 0  }
   0x8 LB: > { %s366_s15 = sadd.s32 4294967295, %s600_s14   ;;  %s367_s16 = sadd.s32 4294967294, %s600_s14   ;;  %s600_s14 = sphi %s628_s14, %s21_s14   ;;  %s596_s13 = sphi %s626_s13, %s768_s13   ;;  %s592_s12 = sphi %s624_s12, %s767_s12   ;;  %s588_s11 = sphi %s622_s11, %s766_s11   ;;  %s584_s10 = sphi %s620_s10, %s765_s10   ;;  %s580_s9 = sphi %s618_s9, %s764_s9  }
   0x9   : > { %s33_s17 = sadd.s32 1, %s596_s13  ;;  %s40_s18 = sadd.s32 1, %s588_s11 }
   0xa   : > { %p35_p0 = scmp.ge.s32.totalorder %s33_s17, 2  ;;  %p47_p1 = scmp.ne.s32.totalorder %s588_s11, %s584_s10 }
   0xb   : > { %p48_p2 = scmp.eq.s32.totalorder %s600_s14, 0  ;;  %p53_p3 = scmp.ne.s32.totalorder %s584_s10, %s580_s9 }
   0xc   : > { %s770_s17 = smov (%p35_p0, %s33_s17), 0  ;;  %p54_p5 = scmp.eq.s32.totalorder %s366_s15, 0 }
   0xd   : > { %p659_p4 = por %p48_p2, %p47_p1  ;;  %s37_s20 = ssub.s32 %s596_s13, %s770_s17 }
   0xe   : > { %p107_p6 = scmp.eq.s32.totalorder %s366_s15, 1  ;;  %p38_p7 = scmp.eq.s32.totalorder %s37_s20, 0 }
   0xf   : > { %p665_p8 = por %p54_p5, %p53_p3  ;;  %p113_p10 = scmp.eq.s32.totalorder %s367_s16, 1 }
  0x10   : > { %p669_p9 = por %p107_p6, %p47_p1  ;;  %p369_p12 = scmp.ge.s32.totalorder %s600_s14, 2 }
  0x11   : > { %s674_s23 = scalar_select %p38_p7, %s588_s11, %s40_s18  }
  0x12   : > { %p676_p11 = por %p113_p10, %p53_p3  ;;  %p403_p13 = scmp.lt.s32.totalorder %s600_s14, 2 }
  0x13   : > { %s133_s25 = sand.u32 1, %s588_s11   ;;  %s371_s27 = sshll.u32 %s596_s13, 2 }
  0x14   : > { %s370_s26 = sshll.u32 %s133_s25, 2  ;;  %s141_s30 = scalar_lea.hbm %s756_s0, %s371_s27 }
  0x15   : > { %s137_s3 = scalar_lea.vmem [#allocation2], %s370_s26  ;;  %s143_s5 = sshll.u32 %s141_s30, 4  ;;  %s144_s5 = int_to_ptr.hbm [resolvable:$true] %s143_s5 }
  0x16   : > { %s145_s4 = sshll.u32 %s137_s3, 4  ;;  %p689_p0 = pnand %p403_p13, %p659_p4  ;;  %s146_s4 = int_to_ptr.vmem [resolvable:$true] %s145_s4 }
  0x17   : > { %p375_p1 = scmp.ge.s32.totalorder %s600_s14, 1  ;;  %p172_p2 = scmp.lt.s32.totalorder %s600_s14, 3 }
  0x18   : > { %s134_s7 = scalar_lea.sflag [#allocation3], %s133_s25  ;;  %s372_s8 = sshll.u32 %s133_s25, 4 }
  0x19   : > { %395 = dma.hbm_to_vmem [thread:$0]  (!%p689_p0), %s144_s5, 64, %s146_s4, %s134_s7  }
  0x1a   : > { %p173_p3 = pnand %p375_p1, %p172_p2  ;;  %s384_s15 = sshll.u32 %s596_s13, 4 }
  0x1b   : > { %s163_s20 = scalar_lea.hbm %s757_s1, %s384_s15  ;;  %s156_s26 = scalar_lea.vmem [#allocation5], %s372_s8 }
  0x1c   : > { %s167_s19 = sshll.u32 %s156_s26, 4  ;;  %s165_s27 = sshll.u32 %s163_s20, 4  ;;  %s168_s19 = int_to_ptr.vmem [resolvable:$true] %s167_s19  ;;  %s166_s27 = int_to_ptr.hbm [resolvable:$true] %s165_s27 }
  0x1d   : > { %s153_s28 = scalar_lea.sflag [#allocation6], %s133_s25  ;;  %176 = sbr.rel (%p173_p3) target bundleno = 53 (0x35), region = 28 }
  0x1e   : > { %398 = dma.hbm_to_vmem [thread:$0]  (!%p689_p0), %s166_s27, 256, %s168_s19, %s153_s28  }
  0x1f   : > { %s704_s29 = sand.u32 (!%p173_p3), 1, %s584_s10  }
  0x20   : > { %s376_s30 = sshll.u32 (!%p173_p3), %s704_s29, 2  ;;  %s179_s3 = scalar_lea.sflag (!%p173_p3), [#allocation3], %s704_s29 }
  0x21   : > { %s182_s4 = scalar_lea.vmem (!%p173_p3), [#allocation2], %s376_s30 }
  0x22   : > { %567 = dma.done.wait (%p665_p8), %s179_s3, 64  }
  0x23   : > { %569 = vsyncadd (%p665_p8), %s179_s3, 4294967232  ;;  %s377_s25 = sshll.u32 %s704_s29, 4  ;;  %s189_s5 = scalar_lea.sflag [#allocation6], %s704_s29 }
  0x24   : > { %s192_s6 = scalar_lea.vmem [#allocation5], %s377_s25 }
  0x25   : > { %571 = dma.done.wait (%p665_p8), %s189_s5, 256  }
  0x26   : > { %573 = vsyncadd (%p665_p8), %s189_s5, 4294967040  ;;  %v219_v0 = vld [vmem:[%s182_s4] sm:$0xf]  ;;  %s385_s7 = sshll.u32 %s592_s12, 4  ;;  %v602_v1 = vmov 0.0   ;;  %vm231_vm1 = vcmask 1043456  }
  0x27   : > { %vm220_vm0 = vcmp.lt.f32.partialorder %v219_v0, 0.7  ;;  %s254_s16 = scalar_lea.hbm %s758_s2, %s385_s7  ;;  %v222_v7 = vld [vmem:[%s192_s6] sm:$0xff]  ;;  %v223_v9 = vld [vmem:[%s192_s6 + $0x8] sm:$0xff]  ;;  %s218_s21 = scalar_lea.vmem [#allocation7], %s377_s25 }
  0x28   : > { %v221_v2 = vsel %vm220_vm0, 1.1764706, %v602_v1  ;;  %s256_s12 = sshll.u32 %s218_s21, 4  ;;  %s258_s18 = sshll.u32 %s254_s16, 4  ;;  %s257_s12 = int_to_ptr.vmem [resolvable:$true] %s256_s12  ;;  %s259_s18 = int_to_ptr.hbm [resolvable:$true] %s258_s18 }
  0x29   : > { %v225_v3 = vperm.slane %v221_v2, 0  ;;  %v226_v4 = vperm.slane %v221_v2, 1  ;;  %v227_v5 = vperm.slane %v221_v2, 2  ;;  %v228_v6 = vperm.slane %v221_v2, 3  ;;  %s241_s20 = scalar_lea.sflag [#allocation4], %s704_s29  ;;  %s528_s26 = sshra.s32 %s259_s18, 4  ;;  %s529_s26 = int_to_ptr.hbm [resolvable:$true] %s528_s26 }
  0x2a   : > { %s530_s19 = scalar_lea.hbm %s529_s26, 16  ;;  %s534_s30 = scalar_lea.hbm %s758_s2, 32 }
  0x2b   : > { %v229_v8 = vrot.slane %v226_v4, 4  ;;  %v230_v10 = vrot.slane %v228_v6, 4  ;;  %p531_p4 = scmp.ne.s32.totalorder %s529_s26, %s530_s19  ;;  %p535_p7 = scmp.lt.s32.totalorder %s529_s26, %s758_s2 }
  0x2c   : > { %p536_p8 = scmp.lt.s32.totalorder %s534_s30, %s530_s19 }
  0x2d   : > { %v232_v11 = vsel %vm231_vm1, %v225_v3, %v229_v8  ;;  %v233_v12 = vsel %vm231_vm1, %v227_v5, %v230_v10  ;;  %p532_p5 = pnand %p531_p4, %p669_p9 }
  0x2e   : > { %v236_v13 = vmul.f32 %v232_v11, %v222_v7  ;;  %v237_v14 = vmul.f32 %v233_v12, %v223_v9  ;;  %p537_p10 = por %p536_p8, %p535_p7 }
  0x2f   : > { %p533_p6 = pneg %p532_p5 }
  0x30   : > { %238 = vst [vmem:[%s218_s21] sm:$0xff] %v236_v13 }
  0x31   : > { %239 = vst [vmem:[%s218_s21 + $0x8] sm:$0xff] %v237_v14  ;;  %p538_p13 = pnand %p537_p10, %p533_p6 }
  0x33   : > { %541 = shalt.err (!%p538_p13)
}
  0x34   : > { %390 = dma.vmem_to_hbm [thread:$0]  (%p669_p9), %s257_s12, 256, %s259_s18, %s241_s20  }
  0x35 PF: > { %s270_s29 = sand.u32 1, %s580_s9   ;;  %p400_p0 = pnand %p369_p12, %p676_p11 }
  0x36   : > { %s271_s25 = scalar_lea.sflag [#allocation4], %s270_s29 }
  0x37   : > { %p401_p1 = pneg %p400_p0 }
  0x39   : > { %575 = dma.done.wait (%p401_p1), %s271_s25, 256  }
  0x3a   : > { %577 = vsyncadd (%p401_p1), %s271_s25, 4294967040  ;;  %s21_s14 = sadd.s32 1, %s600_s14   ;;  %s764_s9 = smov %s584_s10 }
  0x3b   : > { %p18_p2 = scmp.ge.s32.totalorder %s21_s14, 4   ;;  %s765_s10 = smov %s588_s11 }
  0x3c   : > { %s766_s11 = smov %s674_s23  ;;  %s767_s12 = smov %s596_s13 }
  0x3d   : > { %s768_s13 = smov %s770_s17  ;;  %20 = sbr.rel (!%p18_p2) target bundleno = 8 (0x8), region = 86 }
  0x42   :  { %277 = vsyncpa [#allocation3], 1 }
  0x43   :  { %279 = vsyncpa [#allocation3 + $0x1], 1 }
  0x44   :  { %280 = vsyncpa [#allocation6], 1 }
  0x45   :  { %282 = vsyncpa [#allocation6 + $0x1], 1 }
  0x46   :  { %283 = vsyncpa [#allocation4], 1 }
  0x47   :  { %285 = vsyncpa [#allocation4 + $0x1], 1 }

</bundles_post_ra>
